<compile_context>
chip_gen: v6e
topology: v6e:2x2x1
jax: 0.10.0
libtpu: 0.0.40
codegen_flags: <defaults>
</compile_context>

<pallas_src>
import functools

import jax
import jax.numpy as jnp
import numpy as np
from jax import lax
from jax.experimental import pallas as pl
from jax.experimental.pallas import tpu as pltpu

LANE = 128  # pad conv output channels to a full lane width


# ----------------------------------------------------------------------------
# Per-generation knobs (tile size / scoped VMEM)
# ----------------------------------------------------------------------------
@functools.lru_cache(maxsize=1)
def _device_kind():
    try:
        return jax.devices()[0].device_kind.lower()
    except Exception:  # pragma: no cover
        return ""


def _pick_tm():
    kind = _device_kind()
    if "v6" in kind:
        return 1024          # single big TC, 128 MiB VMEM: bigger tiles amortize
    return 512               # v5e (16 MiB scoped default) / v7x (64 MiB physical)


def _vmem_limit_bytes():
    kind = _device_kind()
    if "v7" in kind or "tpu7" in kind:
        return 48 * 1024 * 1024    # v7x: 64 MiB physical per TC -> leave headroom
    return 64 * 1024 * 1024        # v5e/v6e: 128 MiB physical


def _compiler_params():
    return pltpu.CompilerParams(
        dimension_semantics=("parallel",),
        vmem_limit_bytes=_vmem_limit_bytes(),
    )


# ----------------------------------------------------------------------------
# Pallas kernel: A @ W + bias (+ ReLU), M tiled, weights resident
# ----------------------------------------------------------------------------
def _mm_bias_kernel(relu, a_ref, w_ref, b_ref, o_ref):
    out = jnp.dot(a_ref[...], w_ref[...], preferred_element_type=jnp.float32)
    out = out + b_ref[...]
    if relu:
        out = jnp.maximum(out, 0.0)
    o_ref[...] = out.astype(o_ref.dtype)


def matmul_bias(a, w, bias2d, *, relu=False, tm=512):
    """(M,K) @ (K,N) + bias(1,N), optional ReLU.  M is tiled, K/N stay whole
    (K <= ~600 and N is a single lane-padded block for this model)."""
    M, K = a.shape
    K2, N = w.shape
    assert K == K2, (K, K2)
    TM = M if M <= tm else tm
    grid = (pl.cdiv(M, TM),)
    return pl.pallas_call(
        functools.partial(_mm_bias_kernel, bool(relu)),
        out_shape=jax.ShapeDtypeStruct((M, N), jnp.float32),
        grid=grid,
        in_specs=[
            pl.BlockSpec((TM, K), lambda i: (i, 0)),   # activation tile (pipelined)
            pl.BlockSpec((K, N), lambda i: (0, 0)),    # weights resident
            pl.BlockSpec((1, N), lambda i: (0, 0)),    # bias resident
        ],
        out_specs=pl.BlockSpec((TM, N), lambda i: (i, 0)),
        compiler_params=_compiler_params(),
    )(a, w, bias2d)


# ----------------------------------------------------------------------------
# Pallas kernel: fused FC head  relu(flat @ W1 + b1) @ W2 + b2
# ----------------------------------------------------------------------------
def _fc_head_kernel(a_ref, w1_ref, b1_ref, w2_ref, b2_ref, o_ref):
    h = jnp.dot(a_ref[...], w1_ref[...], preferred_element_type=jnp.float32)
    h = jnp.maximum(h + b1_ref[...], 0.0)
    out = jnp.dot(h, w2_ref[...], preferred_element_type=jnp.float32)
    o_ref[...] = (out + b2_ref[...]).astype(o_ref.dtype)


def fc_head(flat, w1, b1, w2, b2, *, tm=512):
    M, K = flat.shape
    K2, H = w1.shape
    H2, N = w2.shape
    assert K == K2 and H == H2, (K, K2, H, H2)
    TM = M if M <= tm else tm
    grid = (pl.cdiv(M, TM),)
    return pl.pallas_call(
        _fc_head_kernel,
        out_shape=jax.ShapeDtypeStruct((M, N), jnp.float32),
        grid=grid,
        in_specs=[
            pl.BlockSpec((TM, K), lambda i: (i, 0)),
            pl.BlockSpec((K, H), lambda i: (0, 0)),
            pl.BlockSpec((1, H), lambda i: (0, 0)),
            pl.BlockSpec((H, N), lambda i: (0, 0)),
            pl.BlockSpec((1, N), lambda i: (0, 0)),
        ],
        out_specs=pl.BlockSpec((TM, N), lambda i: (i, 0)),
        compiler_params=_compiler_params(),
    )(flat, w1, b1, w2, b2)


# ----------------------------------------------------------------------------
# im2col (NHWC, JAX glue) + conv via the Pallas matmul kernel
# ----------------------------------------------------------------------------
def _im2col_nhwc(x, kh, kw, stride):
    """x: (B,H,W,C) -> (B*Ho*Wo, kh*kw*C) with K index = (i*kw + j)*C + c."""
    B, H, W, C = x.shape
    Ho = (H - kh) // stride + 1
    Wo = (W - kw) // stride + 1
    patches = []
    for i in range(kh):
        for j in range(kw):
            patches.append(
                x[:, i:i + stride * (Ho - 1) + 1:stride,
                     j:j + stride * (Wo - 1) + 1:stride, :]
            )
    p = jnp.stack(patches, axis=3)                       # (B, Ho, Wo, kh*kw, C)
    return p.reshape(B * Ho * Wo, kh * kw * C), Ho, Wo


def conv2d_pallas_nhwc(x, w_kn, b_pad, kh, kw, stride, oc, *, tm):
    """x: (B,H,W,Cin) NHWC; w_kn: (kh*kw*Cin, Npad); b_pad: (1, Npad)."""
    B = x.shape[0]
    a, Ho, Wo = _im2col_nhwc(x, kh, kw, stride)
    out = matmul_bias(a, w_kn, b_pad, relu=True, tm=tm)   # (M, Npad), lane-dense
    return out[:, :oc].reshape(B, Ho, Wo, oc)             # drop zero pad channels


# ----------------------------------------------------------------------------
# Parameter init (PyTorch layout) + one-time kernel-layout preparation
# ----------------------------------------------------------------------------
def _conv_out(h, k, s):
    return (h - k) // s + 1


def init_params(input_shape, key):
    c, h, w = input_shape
    h1, w1 = _conv_out(h, 8, 4), _conv_out(w, 8, 4)
    h2, w2 = _conv_out(h1, 4, 2), _conv_out(w1, 4, 2)
    h3, w3 = _conv_out(h2, 3, 1), _conv_out(w2, 3, 1)
    flat_size = 64 * h3 * w3

    keys = jax.random.split(key, 10)

    def u(k, shape, fan_in):
        bound = 1.0 / np.sqrt(fan_in)
        return jax.random.uniform(k, shape, jnp.float32, -bound, bound)

    params = {
        "w1": u(keys[0], (32, c, 8, 8), c * 64),
        "b1": u(keys[1], (32,), c * 64),
        "w2": u(keys[2], (64, 32, 4, 4), 32 * 16),
        "b2": u(keys[3], (64,), 32 * 16),
        "w3": u(keys[4], (64, 64, 3, 3), 64 * 9),
        "b3": u(keys[5], (64,), 64 * 9),
        "fc1_w": u(keys[6], (512, flat_size), flat_size),
        "fc1_b": u(keys[7], (512,), flat_size),
        "out_w": u(keys[8], (512, 512), 512),
        "out_b": u(keys[9], (512,), 512),
    }
    return params, (h3, w3)


def _conv_w_to_kn(w):
    """(Cout,Cin,kh,kw) -> (kh*kw*Cin, Cout); row index = (i*kw+j)*Cin + c."""
    oc, ic, kh, kw = w.shape
    return w.transpose(2, 3, 1, 0).reshape(kh * kw * ic, oc)


def _pad_n(w_kn, b, npad):
    K, N = w_kn.shape
    if N == npad:
        return w_kn, b.reshape(1, N)
    wp = jnp.zeros((K, npad), w_kn.dtype).at[:, :N].set(w_kn)
    bp = jnp.zeros((1, npad), b.dtype).at[0, :N].set(b)
    return wp, bp


def prepare_params(params, h3, w3):
    """One-time: reshape/transpose/pad weights into kernel-ready layouts."""
    # Fold the /255 input scale into conv1's weight: (x/255)@W == x@(W/255).
    w1 = _conv_w_to_kn(params["w1"]) * (1.0 / 255.0)
    w1p, b1p = _pad_n(w1, params["b1"], LANE)
    w2p, b2p = _pad_n(_conv_w_to_kn(params["w2"]), params["b2"], LANE)
    w3p, b3p = _pad_n(_conv_w_to_kn(params["w3"]), params["b3"], LANE)

    # fc1 consumes a PyTorch NCHW flatten (c,h,w); internally we flatten NHWC
    # (h,w,c), so permute fc1's input rows once here (zero numerical change).
    C = 64
    fc1_kn = params["fc1_w"].T                               # (C*h3*w3, 512)
    fc1_kn = (fc1_kn.reshape(C, h3, w3, 512)
                    .transpose(1, 2, 0, 3)
                    .reshape(h3 * w3 * C, 512))
    out_kn = params["out_w"].T                               # (512, 512)
    return {
        "w1": w1p, "b1": b1p,
        "w2": w2p, "b2": b2p,
        "w3": w3p, "b3": b3p,
        "fc1_w": fc1_kn, "fc1_b": params["fc1_b"].reshape(1, 512),
        "out_w": out_kn, "out_b": params["out_b"].reshape(1, 512),
    }


# ----------------------------------------------------------------------------
# Forward pass (Pallas) and pure-JAX reference
# ----------------------------------------------------------------------------
def rnd_forward(x, kparams, *, tm=None):
    """x: (B, C, H, W) float32 in [0, 255] (PyTorch layout at the boundary)."""
    if tm is None:
        tm = _pick_tm()
    h = x.transpose(0, 2, 3, 1)                               # NHWC internally
    h = conv2d_pallas_nhwc(h, kparams["w1"], kparams["b1"], 8, 8, 4, 32, tm=tm)
    h = conv2d_pallas_nhwc(h, kparams["w2"], kparams["b2"], 4, 4, 2, 64, tm=tm)
    h = conv2d_pallas_nhwc(h, kparams["w3"], kparams["b3"], 3, 3, 1, 64, tm=tm)
    B = h.shape[0]
    flat = h.reshape(B, -1)          # NHWC flatten; fc1 rows pre-permuted to match
    return fc_head(flat, kparams["fc1_w"], kparams["fc1_b"],
                   kparams["out_w"], kparams["out_b"], tm=tm)


def rnd_reference(x, params):
    dn = ("NCHW", "OIHW", "NCHW")

    def conv(h, w, b, s):
        y = lax.conv_general_dilated(h, w, (s, s), "VALID", dimension_numbers=dn)
        return jnp.maximum(y + b[None, :, None, None], 0.0)

    h = x / 255.0
    h = conv(h, params["w1"], params["b1"], 4)
    h = conv(h, params["w2"], params["b2"], 2)
    h = conv(h, params["w3"], params["b3"], 1)
    flat = h.reshape(h.shape[0], -1)
    h = jnp.maximum(flat @ params["fc1_w"].T + params["fc1_b"], 0.0)
    return h @ params["out_w"].T + params["out_b"]


# ----------------------------------------------------------------------------
if __name__ == "__main__":
    key = jax.random.PRNGKey(0)
    k_x, k_p = jax.random.split(key)

    # Small shapes consistent with the module: 3 strided convs need H,W >= 36.
    input_shape = (4, 36, 36)  # (C, H, W)
    batch = 2

    params, (h3, w3) = init_params(input_shape, k_p)
    kparams = prepare_params(params, h3, w3)          # one-time weight prep
    x = jax.random.uniform(k_x, (batch,) + input_shape, jnp.float32, 0.0, 255.0)

    out = jax.block_until_ready(rnd_forward(x, kparams))
    ref = jax.block_until_ready(rnd_reference(x, params))

    assert out.shape == (batch, 512), out.shape
    np.testing.assert_allclose(np.asarray(out), np.asarray(ref), rtol=1e-4, atol=1e-4)
    print("KERNEL_OK")
</pallas_src>

<mosaic_0001>
module attributes {stable_mosaic.version = 11 : i64} {
  func.func @_mm_bias_kernel(%arg0: i32, %arg1: memref<128x256xf32, #tpu.memory_space<vmem>>, %arg2: memref<256x128xf32, #tpu.memory_space<vmem>>, %arg3: memref<1x128xf32, #tpu.memory_space<vmem>>, %arg4: memref<128x128xf32, #tpu.memory_space<vmem>>) attributes {dimension_semantics = [#tpu.dimension_semantics<parallel>], iteration_bounds = array<i64: 1>, scalar_prefetch = 0 : i64, scratch_operands = 0 : i64, tpu.core_type = #tpu.core_type<tc>, window_params = [{transform_indices = @transform_0, window_bounds = array<i64: 128, 256>}, {pipeline_mode = #tpu.pipeline_mode<synchronous>, transform_indices = @transform_1, window_bounds = array<i64: 256, 128>}, {pipeline_mode = #tpu.pipeline_mode<synchronous>, transform_indices = @transform_2, window_bounds = array<i64: 1, 128>}, {transform_indices = @transform_3, window_bounds = array<i64: 128, 128>}]} {
    %c0 = arith.constant 0 : index
    %c0_0 = arith.constant 0 : index
    %0 = vector.load %arg1[%c0, %c0_0] : memref<128x256xf32, #tpu.memory_space<vmem>>, vector<128x256xf32>
    %c0_1 = arith.constant 0 : index
    %c0_2 = arith.constant 0 : index
    %1 = vector.load %arg2[%c0_1, %c0_2] : memref<256x128xf32, #tpu.memory_space<vmem>>, vector<256x128xf32>
    %cst = arith.constant dense<0.000000e+00> : vector<128x128xf32>
    %2 = tpu.matmul %0, %1, %cst {dimension_numbers = #tpu.dot_dimension_numbers<[1], [0], [0], [1], [0, 0, 1, 1], [], []>} : vector<128x256xf32>, vector<256x128xf32>, vector<128x128xf32> -> vector<128x128xf32>
    %c0_3 = arith.constant 0 : index
    %c0_4 = arith.constant 0 : index
    %3 = vector.load %arg3[%c0_3, %c0_4] : memref<1x128xf32, #tpu.memory_space<vmem>>, vector<1x128xf32>
    %4 = vector.broadcast %3 : vector<1x128xf32> to vector<128x128xf32>
    %5 = arith.addf %2, %4 : vector<128x128xf32>
    %cst_5 = arith.constant 0.000000e+00 : f32
    %6 = vector.broadcast %cst_5 : f32 to vector<128x128xf32>
    %7 = arith.maximumf %5, %6 : vector<128x128xf32>
    %c0_6 = arith.constant 0 : index
    %c0_7 = arith.constant 0 : index
    %8 = vector.load %arg4[%c0_6, %c0_7] : memref<128x128xf32, #tpu.memory_space<vmem>>, vector<128x128xf32>
    tpu.vector_store %arg4[%c0_6, %c0_7], %7 {strides = array<i32>} : memref<128x128xf32, #tpu.memory_space<vmem>>, vector<128x128xf32>,
    return
  }
  func.func @transform_0(%arg0: i32) -> (i32, i32) {
    %c0_i32 = arith.constant 0 : i32
    %c0_i32_0 = arith.constant 0 : i32
    return %arg0, %c0_i32 : i32, i32
  }
  func.func @transform_1(%arg0: i32) -> (i32, i32) {
    %c0_i32 = arith.constant 0 : i32
    %c0_i32_0 = arith.constant 0 : i32
    %c0_i32_1 = arith.constant 0 : i32
    return %c0_i32, %c0_i32_0 : i32, i32
  }
  func.func @transform_2(%arg0: i32) -> (i32, i32) {
    %c0_i32 = arith.constant 0 : i32
    %c0_i32_0 = arith.constant 0 : i32
    %c0_i32_1 = arith.constant 0 : i32
    return %c0_i32, %c0_i32_0 : i32, i32
  }
  func.func @transform_3(%arg0: i32) -> (i32, i32) {
    %c0_i32 = arith.constant 0 : i32
    %c0_i32_0 = arith.constant 0 : i32
    return %arg0, %c0_i32 : i32, i32
  }
}

</mosaic_0001>

<bundles_post_ra>
// kernel: tpu_custom_call.1
= control target key start
LH: loop header
LB: loop body
LE: loop exit
PB: predicated region body
PF: predicated region fallthrough
CT: control target
= control target key end

     0   :  { %8 = vsyncpa [#allocation3], 0  ;;  %s558_s0 = inlined_call_operand.hbm [shape: f32[128,256], index: 0, kind: input, shape index: {}]   ;;  %s559_s1 = inlined_call_operand.hbm [shape: f32[256,128], index: 1, kind: input, shape index: {}]   ;;  %s560_s2 = inlined_call_operand.vmem [shape: f32[1,128], index: 2, kind: input, shape index: {}]   ;;  %s561_s3 = inlined_call_operand.hbm [shape: f32[128,128], index: 3, kind: output, shape index: {}]  }
   0x1   :  { %9 = vsyncpa [#allocation6], 0 }
   0x2   :  { %10 = vsyncpa [#allocation4], 0  ;;  %s495_s12 = smov [#allocation2]  }
   0x3   :  { %s16_s13 = sshll.u32 %s495_s12, 4  ;;  %s17_s13 = int_to_ptr.vmem [resolvable:$true] %s16_s13 }
   0x4   :  { %s437_s14 = scalar_lea.vmem %s17_s13, 4096  ;;  %p442_p1 = scmp.lt.s32.totalorder %s17_s13, %s17_s13 }
   0x5   :  { %p438_p0 = scmp.ne.s32.totalorder %s17_s13, %s437_s14  ;;  %p443_p2 = scmp.lt.s32.totalorder %s437_s14, %s437_s14 }
   0x7   :  { %p444_p3 = por %p443_p2, %p442_p1 }
   0x9   :  { %p445_p4 = pnand %p444_p3, %p438_p0 }
   0xb   :  { %448 = shalt.err (!%p445_p4)
}
   0xc   :  { %s496_s15 = smov 256   ;;  %s497_s16 = smov 16  }
   0xd   :  { %22 = dma.hbm_to_vmem [thread:$0]  %s558_s0, 4096, %s17_s13, [#allocation3], %s496_s15, %s496_s15, %s497_s16  }
   0xe   :  { %s498_s19 = smov [#allocation5]  }
   0xf   :  { %s28_s20 = sshll.u32 %s498_s19, 4  ;;  %s29_s20 = int_to_ptr.vmem [resolvable:$true] %s28_s20 }
  0x10   :  { %s457_s21 = scalar_lea.vmem %s29_s20, 4096  ;;  %p462_p6 = scmp.lt.s32.totalorder %s29_s20, %s29_s20 }
  0x11   :  { %p458_p5 = scmp.ne.s32.totalorder %s29_s20, %s457_s21  ;;  %p463_p7 = scmp.lt.s32.totalorder %s457_s21, %s457_s21 }
  0x13   :  { %p464_p8 = por %p463_p7, %p462_p6 }
  0x15   :  { %p465_p9 = pnand %p464_p8, %p458_p5 }
  0x17   :  { %468 = shalt.err (!%p465_p9)
}
  0x18   :  { %s499_s22 = smov 128   ;;  %s500_s23 = smov 8  }
  0x19   :  { %34 = dma.hbm_to_vmem [thread:$0]  %s559_s1, 4096, %s29_s20, [#allocation6], %s499_s22, %s499_s22, %s500_s23  }
  0x1a   :  { %489 = dma.done.wait [#allocation3], 4096  }
  0x1b   :  { %490 = vsyncadd [#allocation3], 4294963200 }
  0x1c   :  { %491 = dma.done.wait [#allocation6], 4096  }
  0x1d   :  { %492 = vsyncadd [#allocation6], 4294963200  ;;  %v106_v0 = vld [vmem:[#allocation5 + $0xf8] sm:$0xff]  ;;  %v105_v2 = vld [vmem:[#allocation5 + $0xf0] sm:$0xff] }
  0x1e   :  { %v90_v1 = vld [vmem:[#allocation5 + $0x78] sm:$0xff]  ;;  %310 = vmatprep.subr.mxu0 %v106_v0  ;;  %390 = vmatprep.subr.mxu1 %v106_v0  ;;  %v89_v3 = vld [vmem:[#allocation5 + $0x70] sm:$0xff]  ;;  %v104_v4 = vld [vmem:[#allocation5 + $0xe8] sm:$0xff] }
  0x1f   :  { %311 = vmatpush3.msra.mxu0 %v90_v1  ;;  %406 = vmatpush3.msra.mxu1 %v90_v1  ;;  %v88_v5 = vld [vmem:[#allocation5 + $0x68] sm:$0xff]  ;;  %v103_v6 = vld [vmem:[#allocation5 + $0xe0] sm:$0xff]  ;;  %v102_v8 = vld [vmem:[#allocation5 + $0xd8] sm:$0xff] }
  0x20   :  { %312 = vmatprep.subr.mxu0 %v105_v2  ;;  %391 = vmatprep.subr.mxu1 %v105_v2  ;;  %v87_v7 = vld [vmem:[#allocation5 + $0x60] sm:$0xff]  ;;  %v86_v9 = vld [vmem:[#allocation5 + $0x58] sm:$0xff]  ;;  %v101_v10 = vld [vmem:[#allocation5 + $0xd0] sm:$0xff] }
  0x21   :  { %313 = vmatpush3.msra.mxu0 %v89_v3  ;;  %407 = vmatpush3.msra.mxu1 %v89_v3  ;;  %v85_v11 = vld [vmem:[#allocation5 + $0x50] sm:$0xff]  ;;  %v100_v12 = vld [vmem:[#allocation5 + $0xc8] sm:$0xff]  ;;  %v99_v14 = vld [vmem:[#allocation5 + $0xc0] sm:$0xff] }
  0x22   :  { %314 = vmatprep.subr.mxu0 %v104_v4  ;;  %392 = vmatprep.subr.mxu1 %v104_v4  ;;  %v84_v13 = vld [vmem:[#allocation5 + $0x48] sm:$0xff]  ;;  %v83_v15 = vld [vmem:[#allocation5 + $0x40] sm:$0xff]  ;;  %v98_v16 = vld [vmem:[#allocation5 + $0xb8] sm:$0xff] }
  0x23   :  { %315 = vmatpush3.msra.mxu0 %v88_v5  ;;  %408 = vmatpush3.msra.mxu1 %v88_v5  ;;  %v82_v17 = vld [vmem:[#allocation5 + $0x38] sm:$0xff]  ;;  %v97_v18 = vld [vmem:[#allocation5 + $0xb0] sm:$0xff]  ;;  %v96_v20 = vld [vmem:[#allocation5 + $0xa8] sm:$0xff] }
  0x24   :  { %316 = vmatprep.subr.mxu0 %v103_v6  ;;  %393 = vmatprep.subr.mxu1 %v103_v6  ;;  %v81_v19 = vld [vmem:[#allocation5 + $0x30] sm:$0xff]  ;;  %v80_v21 = vld [vmem:[#allocation5 + $0x28] sm:$0xff]  ;;  %v95_v22 = vld [vmem:[#allocation5 + $0xa0] sm:$0xff] }
  0x25   :  { %317 = vmatpush3.msra.mxu0 %v87_v7  ;;  %409 = vmatpush3.msra.mxu1 %v87_v7  ;;  %v79_v23 = vld [vmem:[#allocation5 + $0x20] sm:$0xff]  ;;  %v94_v24 = vld [vmem:[#allocation5 + $0x98] sm:$0xff]  ;;  %v93_v26 = vld [vmem:[#allocation5 + $0x90] sm:$0xff] }
  0x26   :  { %318 = vmatprep.subr.mxu0 %v102_v8  ;;  %394 = vmatprep.subr.mxu1 %v102_v8  ;;  %v78_v25 = vld [vmem:[#allocation5 + $0x18] sm:$0xff]  ;;  %v77_v27 = vld [vmem:[#allocation5 + $0x10] sm:$0xff]  ;;  %v92_v28 = vld [vmem:[#allocation5 + $0x88] sm:$0xff] }
  0x27   :  { %319 = vmatpush3.msra.mxu0 %v86_v9  ;;  %410 = vmatpush3.msra.mxu1 %v86_v9  ;;  %v76_v29 = vld [vmem:[#allocation5 + $0x8] sm:$0xff]  ;;  %v91_v30 = vld [vmem:[#allocation5 + $0x80] sm:$0xff]  ;;  %v46_v36 = vld [vmem:[#allocation2 + $0x18] sm:$0xff] }
  0x28   :  { %320 = vmatprep.subr.mxu0 %v101_v10  ;;  %395 = vmatprep.subr.mxu1 %v101_v10  ;;  %v75_v31 = vld [vmem:[#allocation5] sm:$0xff]  ;;  %v44_v32 = vld [vmem:[#allocation2 + $0x8] sm:$0xff]  ;;  %v62_v37 = vld [vmem:[#allocation2 + $0x98] sm:$0xff] }
  0x29   :  { %321 = vmatpush3.msra.mxu0 %v85_v11  ;;  %411 = vmatpush3.msra.mxu1 %v85_v11  ;;  %v60_v33 = vld [vmem:[#allocation2 + $0x88] sm:$0xff]  ;;  %v43_v34 = vld [vmem:[#allocation2] sm:$0xff]  ;;  %v45_v38 = vld [vmem:[#allocation2 + $0x10] sm:$0xff] }
  0x2a   :  { %322 = vmatprep.subr.mxu0 %v100_v12  ;;  %396 = vmatprep.subr.mxu1 %v100_v12  ;;  %v59_v35 = vld [vmem:[#allocation2 + $0x80] sm:$0xff]  ;;  %v61_v39 = vld [vmem:[#allocation2 + $0x90] sm:$0xff]  ;;  %v48_v40 = vld [vmem:[#allocation2 + $0x28] sm:$0xff] }
  0x2b   :  { %323 = vmatpush3.msra.mxu0 %v84_v13  ;;  %412 = vmatpush3.msra.mxu1 %v84_v13  ;;  %v64_v41 = vld [vmem:[#allocation2 + $0xa8] sm:$0xff]  ;;  %v47_v42 = vld [vmem:[#allocation2 + $0x20] sm:$0xff]  ;;  %v50_v44 = vld [vmem:[#allocation2 + $0x38] sm:$0xff] }
  0x2c   :  { %324 = vmatprep.subr.mxu0 %v99_v14  ;;  %397 = vmatprep.subr.mxu1 %v99_v14  ;;  %v63_v43 = vld [vmem:[#allocation2 + $0xa0] sm:$0xff]  ;;  %v66_v45 = vld [vmem:[#allocation2 + $0xb8] sm:$0xff]  ;;  %v49_v46 = vld [vmem:[#allocation2 + $0x30] sm:$0xff] }
  0x2d   :  { %325 = vmatpush3.msra.mxu0 %v83_v15  ;;  %413 = vmatpush3.msra.mxu1 %v83_v15  ;;  %v65_v47 = vld [vmem:[#allocation2 + $0xb0] sm:$0xff]  ;;  %v52_v48 = vld [vmem:[#allocation2 + $0x48] sm:$0xff]  ;;  %v51_v50 = vld [vmem:[#allocation2 + $0x40] sm:$0xff] }
  0x2e   :  { %326 = vmatprep.subr.mxu0 %v98_v16  ;;  %398 = vmatprep.subr.mxu1 %v98_v16  ;;  %v68_v49 = vld [vmem:[#allocation2 + $0xc8] sm:$0xff]  ;;  %v67_v51 = vld [vmem:[#allocation2 + $0xc0] sm:$0xff]  ;;  %v54_v52 = vld [vmem:[#allocation2 + $0x58] sm:$0xff] }
  0x2f   :  { %327 = vmatpush3.msra.mxu0 %v82_v17  ;;  %414 = vmatpush3.msra.mxu1 %v82_v17  ;;  %v70_v53 = vld [vmem:[#allocation2 + $0xd8] sm:$0xff]  ;;  %v53_v54 = vld [vmem:[#allocation2 + $0x50] sm:$0xff]  ;;  %v56_v56 = vld [vmem:[#allocation2 + $0x68] sm:$0xff] }
  0x30   :  { %328 = vmatprep.subr.mxu0 %v97_v18  ;;  %399 = vmatprep.subr.mxu1 %v97_v18  ;;  %v69_v55 = vld [vmem:[#allocation2 + $0xd0] sm:$0xff]  ;;  %v72_v57 = vld [vmem:[#allocation2 + $0xe8] sm:$0xff]  ;;  %v55_v58 = vld [vmem:[#allocation2 + $0x60] sm:$0xff] }
  0x31   :  { %329 = vmatpush3.msra.mxu0 %v81_v19  ;;  %415 = vmatpush3.msra.mxu1 %v81_v19  ;;  %v71_v59 = vld [vmem:[#allocation2 + $0xe0] sm:$0xff]  ;;  %v58_v60 = vld [vmem:[#allocation2 + $0x78] sm:$0xff]  ;;  %v57_v62 = vld [vmem:[#allocation2 + $0x70] sm:$0xff] }
  0x32   :  { %330 = vmatprep.subr.mxu0 %v96_v20  ;;  %400 = vmatprep.subr.mxu1 %v96_v20  ;;  %v74_v61 = vld [vmem:[#allocation2 + $0xf8] sm:$0xff]  ;;  %v73_v63 = vld [vmem:[#allocation2 + $0xf0] sm:$0xff]  ;;  %v534_v2 = vld [vmem:[%s560_s2] ss:$0 sm:$0xff]  ;;  %s501_s2 = smov [#allocation7]  }
  0x33   :  { %331 = vmatpush3.msra.mxu0 %v80_v21  ;;  %416 = vmatpush3.msra.mxu1 %v80_v21  ;;  %s296_s26 = sshll.u32 %s501_s2, 4  ;;  %s297_s26 = int_to_ptr.vmem [resolvable:$true] %s296_s26 }
  0x34   :  { %332 = vmatprep.subr.mxu0 %v95_v22  ;;  %401 = vmatprep.subr.mxu1 %v95_v22  ;;  %s469_s27 = scalar_lea.vmem %s297_s26, 2048  ;;  %p474_p11 = scmp.lt.s32.totalorder %s297_s26, %s297_s26 }
  0x35   :  { %333 = vmatpush3.msra.mxu0 %v79_v23  ;;  %417 = vmatpush3.msra.mxu1 %v79_v23  ;;  %p470_p10 = scmp.ne.s32.totalorder %s297_s26, %s469_s27  ;;  %p475_p12 = scmp.lt.s32.totalorder %s469_s27, %s469_s27 }
  0x36   :  { %334 = vmatprep.subr.mxu0 %v94_v24  ;;  %402 = vmatprep.subr.mxu1 %v94_v24 }
  0x37   :  { %335 = vmatpush3.msra.mxu0 %v78_v25  ;;  %418 = vmatpush3.msra.mxu1 %v78_v25  ;;  %p476_p13 = por %p475_p12, %p474_p11 }
  0x38   :  { %336 = vmatprep.subr.mxu0 %v93_v26  ;;  %403 = vmatprep.subr.mxu1 %v93_v26 }
  0x39   :  { %337 = vmatpush3.msra.mxu0 %v77_v27  ;;  %419 = vmatpush3.msra.mxu1 %v77_v27  ;;  %p477_p0 = pnand %p476_p13, %p470_p10 }
  0x3a   :  { %338 = vmatprep.subr.mxu0 %v92_v28  ;;  %404 = vmatprep.subr.mxu1 %v92_v28 }
  0x3b   :  { %339 = vmatpush3.msra.mxu0 %v76_v29  ;;  %420 = vmatpush3.msra.mxu1 %v76_v29 }
  0x3c   :  { %340 = vmatprep.subr.mxu0 %v91_v30  ;;  %405 = vmatprep.subr.mxu1 %v91_v30 }
  0x3d   :  { %341 = vmatpush3.msra.mxu0 %v75_v31  ;;  %421 = vmatpush3.msra.mxu1 %v75_v31 }
  0x3e   :  { %178 = vmatprep.mubr.f32.mxu0 %v44_v32  ;;  %218 = vmatprep.mubr.f32.mxu1 %v60_v33 }
  0x3f   :  { %179 = vmatmul.mubr.f32.vlgmr.msra.gmra.mxu0 %v43_v34  ;;  %219 = vmatmul.mubr.f32.vlgmr.msra.gmra.mxu1 %v59_v35 }
  0x40   :  { %183 = vmatprep.mubr.f32.mxu0 %v46_v36  ;;  %223 = vmatprep.mubr.f32.mxu1 %v62_v37 }
  0x43   :  { %184 = vmatmul.mubr.f32.gmra.mxu0 %v45_v38  ;;  %224 = vmatmul.mubr.f32.gmra.mxu1 %v61_v39 }
  0x44   :  { %188 = vmatprep.mubr.f32.mxu0 %v48_v40  ;;  %228 = vmatprep.mubr.f32.mxu1 %v64_v41 }
  0x47   :  { %189 = vmatmul.mubr.f32.gmra.mxu0 %v47_v42  ;;  %229 = vmatmul.mubr.f32.gmra.mxu1 %v63_v43 }
  0x48   :  { %193 = vmatprep.mubr.f32.mxu0 %v50_v44  ;;  %233 = vmatprep.mubr.f32.mxu1 %v66_v45 }
  0x4b   :  { %194 = vmatmul.mubr.f32.gmra.mxu0 %v49_v46  ;;  %234 = vmatmul.mubr.f32.gmra.mxu1 %v65_v47 }
  0x4c   :  { %198 = vmatprep.mubr.f32.mxu0 %v52_v48  ;;  %238 = vmatprep.mubr.f32.mxu1 %v68_v49 }
  0x4f   :  { %199 = vmatmul.mubr.f32.gmra.mxu0 %v51_v50  ;;  %239 = vmatmul.mubr.f32.gmra.mxu1 %v67_v51 }
  0x50   :  { %203 = vmatprep.mubr.f32.mxu0 %v54_v52  ;;  %243 = vmatprep.mubr.f32.mxu1 %v70_v53 }
  0x53   :  { %204 = vmatmul.mubr.f32.gmra.mxu0 %v53_v54  ;;  %244 = vmatmul.mubr.f32.gmra.mxu1 %v69_v55 }
  0x54   :  { %208 = vmatprep.mubr.f32.mxu0 %v56_v56  ;;  %248 = vmatprep.mubr.f32.mxu1 %v72_v57 }
  0x57   :  { %209 = vmatmul.mubr.f32.gmra.mxu0 %v55_v58  ;;  %249 = vmatmul.mubr.f32.gmra.mxu1 %v71_v59 }
  0x58   :  { %213 = vmatprep.mubr.f32.mxu0 %v58_v60  ;;  %253 = vmatprep.mubr.f32.mxu1 %v74_v61 }
  0x5b   :  { %214 = vmatmul.mubr.f32.gmra.mxu0 %v57_v62  ;;  %254 = vmatmul.mubr.f32.gmra.mxu1 %v73_v63 }
  0xff   :  { %v342_v0 = vpop.f32.mrf.mxu0  ;;  %v366_v1 = vpop.f32.mrf.mxu1 }
 0x101   :  { %v343_v3 = vpop.f32.mrf.mxu0  ;;  %v367_v4 = vpop.f32.mrf.mxu1 }
 0x102   :  { %v344_v5 = vadd.f32 %v343_v3, %v342_v0  ;;  %v368_v6 = vadd.f32 %v367_v4, %v366_v1 }
 0x103   :  { %v345_v7 = vpop.f32.mrf.mxu0  ;;  %v369_v8 = vpop.f32.mrf.mxu1 }
 0x104   :  { %v181_v9 = vadd.f32 %v344_v5, %v534_v2  ;;  %v221_v10 = vadd.f32 %v368_v6, %v534_v2 }
 0x105   :  { %v346_v11 = vpop.f32.mrf.mxu0  ;;  %v370_v12 = vpop.f32.mrf.mxu1 }
 0x106   :  { %v259_v13 = vmax.f32 %v181_v9, 0.0  ;;  %v267_v14 = vmax.f32 %v221_v10, 0.0  ;;  %v347_v15 = vadd.f32 %v346_v11, %v345_v7  ;;  %v371_v16 = vadd.f32 %v370_v12, %v369_v8 }
 0x107   :  { %v348_v17 = vpop.f32.mrf.mxu0  ;;  %v372_v18 = vpop.f32.mrf.mxu1 }
 0x108   :  { %275 = vst [vmem:[#allocation7] sm:$0xff] %v259_v13  ;;  %283 = vst [vmem:[#allocation7 + $0x40] sm:$0xff] %v267_v14  ;;  %v186_v19 = vadd.f32 %v347_v15, %v534_v2  ;;  %v226_v20 = vadd.f32 %v371_v16, %v534_v2 }
 0x109   :  { %v349_v21 = vpop.f32.mrf.mxu0  ;;  %v373_v22 = vpop.f32.mrf.mxu1 }
 0x10a   :  { %v260_v23 = vmax.f32 %v186_v19, 0.0  ;;  %v268_v24 = vmax.f32 %v226_v20, 0.0  ;;  %v350_v25 = vadd.f32 %v349_v21, %v348_v17  ;;  %v374_v26 = vadd.f32 %v373_v22, %v372_v18 }
 0x10b   :  { %v351_v27 = vpop.f32.mrf.mxu0  ;;  %v375_v28 = vpop.f32.mrf.mxu1 }
 0x10c   :  { %276 = vst [vmem:[#allocation7 + $0x8] sm:$0xff] %v260_v23  ;;  %284 = vst [vmem:[#allocation7 + $0x48] sm:$0xff] %v268_v24  ;;  %v191_v29 = vadd.f32 %v350_v25, %v534_v2  ;;  %v231_v30 = vadd.f32 %v374_v26, %v534_v2 }
 0x10d   :  { %v352_v31 = vpop.f32.mrf.mxu0  ;;  %v376_v32 = vpop.f32.mrf.mxu1 }
 0x10e   :  { %v261_v33 = vmax.f32 %v191_v29, 0.0  ;;  %v269_v34 = vmax.f32 %v231_v30, 0.0  ;;  %v353_v35 = vadd.f32 %v352_v31, %v351_v27  ;;  %v377_v36 = vadd.f32 %v376_v32, %v375_v28 }
 0x10f   :  { %v354_v37 = vpop.f32.mrf.mxu0  ;;  %v378_v38 = vpop.f32.mrf.mxu1 }
 0x110   :  { %277 = vst [vmem:[#allocation7 + $0x10] sm:$0xff] %v261_v33  ;;  %285 = vst [vmem:[#allocation7 + $0x50] sm:$0xff] %v269_v34  ;;  %v196_v39 = vadd.f32 %v353_v35, %v534_v2  ;;  %v236_v40 = vadd.f32 %v377_v36, %v534_v2 }
 0x111   :  { %v355_v41 = vpop.f32.mrf.mxu0  ;;  %v379_v42 = vpop.f32.mrf.mxu1 }
 0x112   :  { %v262_v43 = vmax.f32 %v196_v39, 0.0  ;;  %v270_v44 = vmax.f32 %v236_v40, 0.0  ;;  %v356_v45 = vadd.f32 %v355_v41, %v354_v37  ;;  %v380_v46 = vadd.f32 %v379_v42, %v378_v38 }
 0x113   :  { %v357_v47 = vpop.f32.mrf.mxu0  ;;  %v381_v48 = vpop.f32.mrf.mxu1 }
 0x114   :  { %278 = vst [vmem:[#allocation7 + $0x18] sm:$0xff] %v262_v43  ;;  %286 = vst [vmem:[#allocation7 + $0x58] sm:$0xff] %v270_v44  ;;  %v201_v49 = vadd.f32 %v356_v45, %v534_v2  ;;  %v241_v50 = vadd.f32 %v380_v46, %v534_v2 }
 0x115   :  { %v358_v51 = vpop.f32.mrf.mxu0  ;;  %v382_v52 = vpop.f32.mrf.mxu1 }
 0x116   :  { %v263_v53 = vmax.f32 %v201_v49, 0.0  ;;  %v271_v54 = vmax.f32 %v241_v50, 0.0  ;;  %v359_v55 = vadd.f32 %v358_v51, %v357_v47  ;;  %v383_v56 = vadd.f32 %v382_v52, %v381_v48 }
 0x117   :  { %v360_v57 = vpop.f32.mrf.mxu0  ;;  %v384_v58 = vpop.f32.mrf.mxu1 }
 0x118   :  { %279 = vst [vmem:[#allocation7 + $0x20] sm:$0xff] %v263_v53  ;;  %287 = vst [vmem:[#allocation7 + $0x60] sm:$0xff] %v271_v54  ;;  %v206_v59 = vadd.f32 %v359_v55, %v534_v2  ;;  %v246_v60 = vadd.f32 %v383_v56, %v534_v2 }
 0x119   :  { %v361_v61 = vpop.f32.mrf.mxu0  ;;  %v385_v62 = vpop.f32.mrf.mxu1 }
 0x11a   :  { %v264_v63 = vmax.f32 %v206_v59, 0.0  ;;  %v272_v0 = vmax.f32 %v246_v60, 0.0  ;;  %v362_v1 = vadd.f32 %v361_v61, %v360_v57  ;;  %v386_v3 = vadd.f32 %v385_v62, %v384_v58 }
 0x11b   :  { %v363_v4 = vpop.f32.mrf.mxu0  ;;  %v387_v5 = vpop.f32.mrf.mxu1 }
 0x11c   :  { %280 = vst [vmem:[#allocation7 + $0x28] sm:$0xff] %v264_v63  ;;  %288 = vst [vmem:[#allocation7 + $0x68] sm:$0xff] %v272_v0  ;;  %v211_v6 = vadd.f32 %v362_v1, %v534_v2  ;;  %v251_v7 = vadd.f32 %v386_v3, %v534_v2 }
 0x11d   :  { %v364_v8 = vpop.f32.mrf.mxu0  ;;  %v388_v9 = vpop.f32.mrf.mxu1 }
 0x11e   :  { %v265_v10 = vmax.f32 %v211_v6, 0.0  ;;  %v273_v11 = vmax.f32 %v251_v7, 0.0  ;;  %v365_v12 = vadd.f32 %v364_v8, %v363_v4  ;;  %v389_v13 = vadd.f32 %v388_v9, %v387_v5 }
 0x120   :  { %281 = vst [vmem:[#allocation7 + $0x30] sm:$0xff] %v265_v10  ;;  %289 = vst [vmem:[#allocation7 + $0x70] sm:$0xff] %v273_v11  ;;  %v216_v14 = vadd.f32 %v365_v12, %v534_v2  ;;  %v256_v15 = vadd.f32 %v389_v13, %v534_v2 }
 0x122   :  { %v266_v16 = vmax.f32 %v216_v14, 0.0  ;;  %v274_v17 = vmax.f32 %v256_v15, 0.0 }
 0x124   :  { %282 = vst [vmem:[#allocation7 + $0x38] sm:$0xff] %v266_v16  ;;  %290 = vst [vmem:[#allocation7 + $0x78] sm:$0xff] %v274_v17 }
 0x125   :  { %480 = shalt.err (!%p477_p0)
}
 0x126   :  { %302 = dma.vmem_to_hbm [thread:$0]  %s297_s26, 2048, %s561_s3, [#allocation4], %s499_s22, %s499_s22, %s500_s23  }
 0x127   :  { %493 = dma.done.wait [#allocation4], 2048  }
 0x128   :  { %494 = vsyncadd [#allocation4], 4294965248 }
 0x129   :  { %306 = vsyncpa [#allocation3], 1 }
 0x12a   :  { %307 = vsyncpa [#allocation6], 1 }
 0x12b   :  { %308 = vsyncpa [#allocation4], 1 }

</bundles_post_ra>
